<compile_context>
chip_gen: v7x
topology: tpu7x:2x2x1
jax: 0.10.0
libtpu: 0.0.40
codegen_flags: <defaults>
</compile_context>

<pallas_src>
import jax
import jax.numpy as jnp
from jax.experimental import pallas as pl
from jax.experimental.pallas import tpu as pltpu

EPS = 1e-5  # RevIN eps


def _round_up(a, m):
    return (a + m - 1) // m * m


def _nlinear_revin_kernel(x_ref, wt_ref, b_ref, aw_ref, ab_ref, o_ref):
    # x_ref : [L, n_tile]  one batch, all timesteps, a lane-tile of variates
    # wt_ref: [T, L]       linear weight (torch layout: out_features x in_features)
    # b_ref : [T, 1]       linear bias (broadcast over lanes)
    # aw_ref: [1, n_tile]  RevIN affine weight (per variate, lane-dense)
    # ab_ref: [1, n_tile]  RevIN affine bias
    # o_ref : [T, n_tile]
    x = x_ref[...].astype(jnp.float32)
    aw = aw_ref[...]
    ab = ab_ref[...]

    # --- RevIN 'norm': stats over time (sublane axis), unbiased=False var ---
    mean = jnp.mean(x, axis=0, keepdims=True)                  # [1, n_tile]
    var = jnp.mean((x - mean) ** 2, axis=0, keepdims=True)     # [1, n_tile]
    inv_std = jax.lax.rsqrt(var + EPS)                         # EUP rsqrt
    stdev = (var + EPS) * inv_std                              # == sqrt(var+EPS)
    xn = (x - mean) * inv_std
    xn = xn * aw + ab

    # --- Linear: seq_len -> pred_len on the MXU (variates stay on lanes) ---
    y = jnp.dot(wt_ref[...], xn, preferred_element_type=jnp.float32) + b_ref[...]

    # --- RevIN 'denorm' (per-lane reciprocal instead of [T,n_tile] divide) ---
    inv_aw = 1.0 / (aw + EPS * EPS)                            # [1, n_tile]
    y = (y - ab) * inv_aw
    y = y * stdev + mean

    o_ref[...] = y.astype(o_ref.dtype)


def _choose_tiling(N, L, T, budget_bytes=16 << 20):
    """Pick the lane tile over variates and the padded N that it divides."""
    if N <= 128:
        # Full-extent block along N (allowed by the (8,128) rule); padding a
        # tiny N up to 128 would only inflate HBM traffic.
        return N, N
    # Largest lane tile (multiple of 128, <= 512) whose double-buffered
    # x/out tiles fit the VMEM budget.
    max_tile = 512
    while max_tile > 128 and 2 * 4 * (L + T) * max_tile > budget_bytes:
        max_tile //= 2
    # Among admissible tiles pick the one minimizing padded traffic,
    # preferring larger tiles (fewer grid steps) on ties.
    best_tile, best_pad = None, None
    for t in range(max_tile, 127, -128):
        pad = _round_up(N, t)
        if best_pad is None or pad < best_pad:
            best_tile, best_pad = t, pad
    return best_tile, best_pad


def _nlinear_backbone(x, w_t, bias_col, aw_row, ab_row, n_tile, vmem_limit):
    B, L, N_pad = x.shape
    T = w_t.shape[0]
    grid = (B, N_pad // n_tile)
    return pl.pallas_call(
        _nlinear_revin_kernel,
        out_shape=jax.ShapeDtypeStruct((B, T, N_pad), jnp.float32),
        grid_spec=pltpu.PrefetchScalarGridSpec(
            num_scalar_prefetch=0,
            grid=grid,
            in_specs=[
                pl.BlockSpec((None, L, n_tile), lambda b, j: (b, 0, j)),
                pl.BlockSpec((T, L), lambda b, j: (0, 0)),
                pl.BlockSpec((T, 1), lambda b, j: (0, 0)),
                pl.BlockSpec((1, n_tile), lambda b, j: (0, j)),
                pl.BlockSpec((1, n_tile), lambda b, j: (0, j)),
            ],
            out_specs=pl.BlockSpec((None, T, n_tile), lambda b, j: (b, 0, j)),
        ),
        compiler_params=pltpu.CompilerParams(
            dimension_semantics=("parallel", "parallel"),
            vmem_limit_bytes=vmem_limit,
        ),
    )(x, w_t, bias_col, aw_row, ab_row)


def fbm_dlinear_forward(history_data, params):
    """history_data: [B, L, N, C] (matches torch input layout).
    Returns [B, pred_len, N, 1]."""
    # TODO(synk): decomposition=True branch (series_decomp moving-average +
    # trend linear) not implemented; this covers the default decomposition=False path.
    W, b, aff_w, aff_b = (params["W"], params["b"],
                          params["affine_w"], params["affine_b"])
    x = history_data[:, :, :, 0]                       # [B, L, N] channel-0 slice
    B, L, N = x.shape
    T = W.shape[1]

    n_tile, N_pad = _choose_tiling(N, L, T)
    if N_pad != N:
        x = jnp.pad(x, ((0, 0), (0, 0), (0, N_pad - N)))
        aff_w = jnp.pad(aff_w, (0, N_pad - N), constant_values=1.0)
        aff_b = jnp.pad(aff_b, (0, N_pad - N))

    w_t = jnp.transpose(W).astype(jnp.float32)         # [T, L] (torch layout)
    bias_col = b.reshape(T, 1).astype(jnp.float32)
    aw_row = aff_w.reshape(1, N_pad).astype(jnp.float32)
    ab_row = aff_b.reshape(1, N_pad).astype(jnp.float32)

    # VMEM budget: double-buffered x/out tiles + (double-buffered) constants.
    block_bytes = 4 * (L + T) * n_tile
    const_bytes = 4 * (T * L + T + 2 * N_pad)
    est = 2 * block_bytes + 2 * const_bytes + (4 << 20)
    vmem_limit = int(min(max(est, 16 << 20), 48 << 20))

    out = _nlinear_backbone(x, w_t, bias_col, aw_row, ab_row,
                            n_tile, vmem_limit)        # [B, T, N_pad]
    return out[:, :, :N][..., None]                    # [B, T, N, 1]


def _reference_forward(history_data, params):
    """Pure-JAX reference mirroring the PyTorch module (decomposition=False)."""
    W, b, aff_w, aff_b = (params["W"], params["b"],
                          params["affine_w"], params["affine_b"])
    x = history_data[:, :, :, 0]
    z = jnp.transpose(x, (0, 2, 1)).astype(jnp.float32)        # [B, N, L]
    mean = jnp.mean(z, axis=2, keepdims=True)
    var = jnp.mean((z - mean) ** 2, axis=2, keepdims=True)
    stdev = jnp.sqrt(var + EPS)
    zn = (z - mean) / stdev
    zn = zn * aff_w[None, :, None] + aff_b[None, :, None]
    y = jnp.einsum("bnl,lt->bnt", zn, W) + b[None, None, :]
    y = (y - aff_b[None, :, None]) / (aff_w[None, :, None] + EPS * EPS)
    y = y * stdev + mean
    return jnp.transpose(y, (0, 2, 1))[..., None]


if __name__ == "__main__":
    # Small deterministic config: seq_len=16, pred_len=8, enc_in=4, batch=2.
    B, L, N, C, T = 2, 16, 4, 3, 8

    key = jax.random.PRNGKey(0)
    k_x, k_w, k_b, k_aw, k_ab = jax.random.split(key, 5)

    history_data = jax.random.normal(k_x, (B, L, N, C), dtype=jnp.float32)

    params = {
        # nn.Linear(context_window, target_window): torch weight [T, L] -> store [L, T]
        "W": (jax.random.normal(k_w, (L, T), dtype=jnp.float32)
              * (1.0 / jnp.sqrt(L))),
        "b": jax.random.normal(k_b, (T,), dtype=jnp.float32) * 0.01,
        # RevIN affine params (torch init: ones / zeros) perturbed deterministically
        "affine_w": 1.0 + 0.1 * jax.random.normal(k_aw, (N,), dtype=jnp.float32),
        "affine_b": 0.05 * jax.random.normal(k_ab, (N,), dtype=jnp.float32),
    }

    out = fbm_dlinear_forward(history_data, params)
    out = jax.block_until_ready(out)
    assert out.shape == (B, T, N, 1), out.shape

    ref = jax.block_until_ready(_reference_forward(history_data, params))
    assert jnp.allclose(out, ref, atol=1e-4, rtol=1e-4), (
        float(jnp.max(jnp.abs(out - ref))))

    print("KERNEL_OK")
</pallas_src>

<mosaic_0001>
module attributes {stable_mosaic.version = 11 : i64} {
  func.func @_nlinear_revin_kernel(%arg0: i32, %arg1: i32, %arg2: memref<1x16x4xf32, #tpu.memory_space<vmem>>, %arg3: memref<8x16xf32, #tpu.memory_space<vmem>>, %arg4: memref<8x1xf32, #tpu.memory_space<vmem>>, %arg5: memref<1x4xf32, #tpu.memory_space<vmem>>, %arg6: memref<1x4xf32, #tpu.memory_space<vmem>>, %arg7: memref<1x8x4xf32, #tpu.memory_space<vmem>>) attributes {dimension_semantics = [#tpu.dimension_semantics<parallel>, #tpu.dimension_semantics<parallel>], iteration_bounds = array<i64: 2, 1>, scalar_prefetch = 0 : i64, scratch_operands = 0 : i64, tpu.core_type = #tpu.core_type<tc>, window_params = [{transform_indices = @transform_0, window_bounds = array<i64: 1, 16, 4>}, {pipeline_mode = #tpu.pipeline_mode<synchronous>, transform_indices = @transform_1, window_bounds = array<i64: 8, 16>}, {pipeline_mode = #tpu.pipeline_mode<synchronous>, transform_indices = @transform_2, window_bounds = array<i64: 8, 1>}, {transform_indices = @transform_3, window_bounds = array<i64: 1, 4>}, {transform_indices = @transform_4, window_bounds = array<i64: 1, 4>}, {transform_indices = @transform_5, window_bounds = array<i64: 1, 8, 4>}]} {
    %c0 = arith.constant 0 : index
    %c0_0 = arith.constant 0 : index
    %c0_1 = arith.constant 0 : index
    %0 = vector.load %arg2[%c0, %c0_0, %c0_1] : memref<1x16x4xf32, #tpu.memory_space<vmem>>, vector<1x16x4xf32>
    %1 = vector.shape_cast %0 : vector<1x16x4xf32> to vector<16x4xf32>
    %c0_2 = arith.constant 0 : index
    %c0_3 = arith.constant 0 : index
    %2 = vector.load %arg5[%c0_2, %c0_3] : memref<1x4xf32, #tpu.memory_space<vmem>>, vector<1x4xf32>
    %c0_4 = arith.constant 0 : index
    %c0_5 = arith.constant 0 : index
    %3 = vector.load %arg6[%c0_4, %c0_5] : memref<1x4xf32, #tpu.memory_space<vmem>>, vector<1x4xf32>
    %cst = arith.constant dense<0.000000e+00> : vector<4xf32>
    %4 = vector.multi_reduction <add>, %1, %cst [0] : vector<16x4xf32> to vector<4xf32>
    %5 = vector.shape_cast %4 : vector<4xf32> to vector<1x4xf32>
    %cst_6 = arith.constant 1.600000e+01 : f32
    %6 = vector.broadcast %cst_6 : f32 to vector<1x4xf32>
    %7 = arith.divf %5, %6 : vector<1x4xf32>
    %8 = vector.broadcast %7 : vector<1x4xf32> to vector<16x4xf32>
    %9 = arith.subf %1, %8 : vector<16x4xf32>
    %10 = arith.mulf %9, %9 : vector<16x4xf32>
    %cst_7 = arith.constant dense<0.000000e+00> : vector<4xf32>
    %11 = vector.multi_reduction <add>, %10, %cst_7 [0] : vector<16x4xf32> to vector<4xf32>
    %12 = vector.shape_cast %11 : vector<4xf32> to vector<1x4xf32>
    %cst_8 = arith.constant 1.600000e+01 : f32
    %13 = vector.broadcast %cst_8 : f32 to vector<1x4xf32>
    %14 = arith.divf %12, %13 : vector<1x4xf32>
    %cst_9 = arith.constant 9.99999974E-6 : f32
    %15 = vector.broadcast %cst_9 : f32 to vector<1x4xf32>
    %16 = arith.addf %14, %15 : vector<1x4xf32>
    %17 = math.rsqrt %16 : vector<1x4xf32>
    %cst_10 = arith.constant 9.99999974E-6 : f32
    %18 = vector.broadcast %cst_10 : f32 to vector<1x4xf32>
    %19 = arith.addf %14, %18 : vector<1x4xf32>
    %20 = arith.mulf %19, %17 : vector<1x4xf32>
    %21 = vector.broadcast %7 : vector<1x4xf32> to vector<16x4xf32>
    %22 = arith.subf %1, %21 : vector<16x4xf32>
    %23 = vector.broadcast %17 : vector<1x4xf32> to vector<16x4xf32>
    %24 = arith.mulf %22, %23 : vector<16x4xf32>
    %25 = vector.broadcast %2 : vector<1x4xf32> to vector<16x4xf32>
    %26 = arith.mulf %24, %25 : vector<16x4xf32>
    %27 = vector.broadcast %3 : vector<1x4xf32> to vector<16x4xf32>
    %28 = arith.addf %26, %27 : vector<16x4xf32>
    %c0_11 = arith.constant 0 : index
    %c0_12 = arith.constant 0 : index
    %29 = vector.load %arg3[%c0_11, %c0_12] : memref<8x16xf32, #tpu.memory_space<vmem>>, vector<8x16xf32>
    %cst_13 = arith.constant dense<0.000000e+00> : vector<8x4xf32>
    %30 = tpu.matmul %29, %28, %cst_13 {dimension_numbers = #tpu.dot_dimension_numbers<[1], [0], [0], [1], [0, 0, 1, 1], [], []>} : vector<8x16xf32>, vector<16x4xf32>, vector<8x4xf32> -> vector<8x4xf32>
    %c0_14 = arith.constant 0 : index
    %c0_15 = arith.constant 0 : index
    %31 = vector.load %arg4[%c0_14, %c0_15] : memref<8x1xf32, #tpu.memory_space<vmem>>, vector<8x1xf32>
    %32 = vector.broadcast %31 : vector<8x1xf32> to vector<8x4xf32>
    %33 = arith.addf %30, %32 : vector<8x4xf32>
    %cst_16 = arith.constant 1.000000e-10 : f32
    %34 = vector.broadcast %cst_16 : f32 to vector<1x4xf32>
    %35 = arith.addf %2, %34 : vector<1x4xf32>
    %cst_17 = arith.constant 1.000000e+00 : f32
    %36 = vector.broadcast %cst_17 : f32 to vector<1x4xf32>
    %37 = arith.divf %36, %35 : vector<1x4xf32>
    %38 = vector.broadcast %3 : vector<1x4xf32> to vector<8x4xf32>
    %39 = arith.subf %33, %38 : vector<8x4xf32>
    %40 = vector.broadcast %37 : vector<1x4xf32> to vector<8x4xf32>
    %41 = arith.mulf %39, %40 : vector<8x4xf32>
    %42 = vector.broadcast %20 : vector<1x4xf32> to vector<8x4xf32>
    %43 = arith.mulf %41, %42 : vector<8x4xf32>
    %44 = vector.broadcast %7 : vector<1x4xf32> to vector<8x4xf32>
    %45 = arith.addf %43, %44 : vector<8x4xf32>
    %c0_18 = arith.constant 0 : index
    %c0_19 = arith.constant 0 : index
    %c0_20 = arith.constant 0 : index
    %46 = vector.load %arg7[%c0_18, %c0_19, %c0_20] : memref<1x8x4xf32, #tpu.memory_space<vmem>>, vector<1x8x4xf32>
    %47 = vector.shape_cast %46 : vector<1x8x4xf32> to vector<8x4xf32>
    %48 = vector.shape_cast %45 : vector<8x4xf32> to vector<1x8x4xf32>
    tpu.vector_store %arg7[%c0_18, %c0_19, %c0_20], %48 {strides = array<i32>} : memref<1x8x4xf32, #tpu.memory_space<vmem>>, vector<1x8x4xf32>,
    return
  }
  func.func @transform_0(%arg0: i32, %arg1: i32) -> (i32, i32, i32) {
    %c0_i32 = arith.constant 0 : i32
    %c0_i32_0 = arith.constant 0 : i32
    return %arg0, %c0_i32, %arg1 : i32, i32, i32
  }
  func.func @transform_1(%arg0: i32, %arg1: i32) -> (i32, i32) {
    %c0_i32 = arith.constant 0 : i32
    %c0_i32_0 = arith.constant 0 : i32
    %c0_i32_1 = arith.constant 0 : i32
    return %c0_i32, %c0_i32_0 : i32, i32
  }
  func.func @transform_2(%arg0: i32, %arg1: i32) -> (i32, i32) {
    %c0_i32 = arith.constant 0 : i32
    %c0_i32_0 = arith.constant 0 : i32
    %c0_i32_1 = arith.constant 0 : i32
    return %c0_i32, %c0_i32_0 : i32, i32
  }
  func.func @transform_3(%arg0: i32, %arg1: i32) -> (i32, i32) {
    %c0_i32 = arith.constant 0 : i32
    %c0_i32_0 = arith.constant 0 : i32
    return %c0_i32, %arg1 : i32, i32
  }
  func.func @transform_4(%arg0: i32, %arg1: i32) -> (i32, i32) {
    %c0_i32 = arith.constant 0 : i32
    %c0_i32_0 = arith.constant 0 : i32
    return %c0_i32, %arg1 : i32, i32
  }
  func.func @transform_5(%arg0: i32, %arg1: i32) -> (i32, i32, i32) {
    %c0_i32 = arith.constant 0 : i32
    %c0_i32_0 = arith.constant 0 : i32
    return %arg0, %c0_i32, %arg1 : i32, i32, i32
  }
}

</mosaic_0001>

<bundles_post_ra>
// kernel: tpu_custom_call.1
= control target key start
LH: loop header
LB: loop body
LE: loop exit
PB: predicated region body
PF: predicated region fallthrough
CT: control target
= control target key end

     0   :  { %s649_s18 = smov 0   ;;  %s651_s19 = smov 0   ;;  %s703_s0 = inlined_call_operand.vmem [shape: f32[2,16,4], index: 0, kind: input, shape index: {}]   ;;  %s704_s1 = inlined_call_operand.vmem [shape: f32[8,16], index: 1, kind: input, shape index: {}]   ;;  %s705_s2 = inlined_call_operand.vmem [shape: f32[8,1], index: 2, kind: input, shape index: {}]   ;;  %s706_s3 = inlined_call_operand.vmem [shape: f32[1,4], index: 3, kind: input, shape index: {}]   ;;  %s707_s4 = inlined_call_operand.vmem [shape: f32[1,4], index: 4, kind: input, shape index: {}]   ;;  %s708_s5 = inlined_call_operand.vmem [shape: f32[2,8,4], index: 5, kind: output, shape index: {}]  }
   0x1   :  { %s653_s20 = smov 0  }
   0x2 LB: > { %s27_s21 = sadd.s32 1, %s609_s19  ;;  %p536_p0 = scmp.ge.s32.totalorder %s613_s20, 1  ;;  %s613_s20 = sphi %s653_s20, %s15_s20   ;;  %s609_s19 = sphi %s651_s19, %s710_s19   ;;  %s605_s18 = sphi %s649_s18, %s709_s18  }
   0x3   : > { %p29_p1 = scmp.ge.s32.totalorder %s27_s21, 2  ;;  %p222_p2 = scmp.lt.s32.totalorder %s613_s20, 3 }
   0x5   : > { %s712_s21 = smov (%p29_p1, %s27_s21), 0  ;;  %p223_p3 = pnand %p536_p0, %p222_p2 }
   0x6   : > { %p261_p4 = scmp.lt.s32.totalorder (!%p223_p3), %s605_s18, 1  ;;  %v615_v0 = vmov (!%p223_p3), 0.0|0.0   ;;  %vm616_vm0 = vmmov (!%p223_p3), 0   ;;  %v617_v1 = vmov (!%p223_p3), 0.0   ;;  %v334_v2 = vld [vmem:[%s705_s2] sm:$0xff] (!%p223_p3)  ;;  %v618_v3 = vmov (!%p223_p3), 0  }
   0x7   : > { %226 = sbr.rel (%p223_p3) target bundleno = 303 (0x12f), region = 40  ;;  %555 = vmatprep.subr.bf16.mxu0 (!%p223_p3), %v615_v0  ;;  %552 = vmatprep.mubr.msk.f32.mxu0 (!%p223_p3), %vm616_vm0, %v617_v1  ;;  %vm286_vm1 = vcmask (!%p223_p3), 31744   ;;  %v318_v30 = vlaneseq (!%p223_p3)  ;;  %v284_v34 = vld [vmem:[%s706_s3] sm:$0x1] (!%p223_p3)  ;;  %vm340_vm2 = vcmask (!%p223_p3), 130048  }
   0x8   : > { %586 = vset.pattern.permute.xlu0 (!%p223_p3), %v618_v3  ;;  %v540_v40 = vld [vmem:[%s707_s4] ss:$0 sm:$0xff] (!%p223_p3)  ;;  %v414_v47 = vadd.f32 (!%p223_p3), 1e-10, %v284_v34 }
   0x9   : > { %337 = vperm.xlu0 (!%p223_p3), %586, %v334_v2   ;;  %v319_v32 = vshrl.u32 (!%p223_p3), %v318_v30, 7  ;;  %v333_v46 = vld [vmem:[%s704_s1] sm:$0xff] (!%p223_p3) }
   0xb   : > { %v320_v33 = vsub.s32 (!%p223_p3), 0, %v319_v32 }
   0xd   : > { %v321_v35 = vrot.slane (!%p223_p3), %v284_v34, %v320_v33 }
   0xe   : > { %s714_s18 = smov (!%p261_p4, %s605_s18), 1 }
   0xf   : > { %s544_s24 = sshll.u32 %s714_s18, 4  ;;  %s539_s9 = sshll.u32 %s714_s18, 3 }
  0x10   : > { %s268_s27 = scalar_lea.vmem %s703_s0, %s544_s24  ;;  %s281_s12 = scalar_lea.vmem %s708_s5, %s539_s9 }
  0x11   : > { %v282_v4 = vld [vmem:[%s268_s27] sm:$0xff]  ;;  %v283_v5 = vld [vmem:[%s268_s27 + $0x8] sm:$0xff] }
  0x12   : > { %v287_v6 = vsel %vm286_vm1, %v282_v4, 0.0  ;;  %v288_v7 = vsel %vm286_vm1, %v283_v5, 0.0 }
  0x13   : > { %v289_v8 = vadd.f32 %v288_v7, %v287_v6 }
  0x15   : > { %v290_v9 = vrot.slane %v289_v8, 4 }
  0x17   : > { %v291_v10 = vadd.f32 %v290_v9, %v289_v8 }
  0x19   : > { %v292_v11 = vrot.slane %v291_v10, 2 }
  0x1b   : > { %v293_v12 = vadd.f32 %v292_v11, %v291_v10 }
  0x1d   : > { %v294_v13 = vrot.slane %v293_v12, 1 }
  0x1f   : > { %v295_v14 = vadd.f32 %v294_v13, %v293_v12 }
  0x21   : > { %v297_v15 = vmul.f32 0.0625, %v295_v14 }
  0x23   : > { %v298_v16 = vsub.f32 %v282_v4, %v297_v15  ;;  %v299_v17 = vsub.f32 %v283_v5, %v297_v15 }
  0x25   : > { %v300_v18 = vmul.f32 %v298_v16, %v298_v16  ;;  %v301_v19 = vmul.f32 %v299_v17, %v299_v17 }
  0x27   : > { %v302_v20 = vsel %vm286_vm1, %v300_v18, 0.0  ;;  %v303_v21 = vsel %vm286_vm1, %v301_v19, 0.0 }
  0x28   : > { %v304_v22 = vadd.f32 %v303_v21, %v302_v20 }
  0x2a   : > { %v305_v23 = vrot.slane %v304_v22, 4 }
  0x2c   : > { %v306_v24 = vadd.f32 %v305_v23, %v304_v22 }
  0x2e   : > { %v307_v25 = vrot.slane %v306_v24, 2 }
  0x30   : > { %v308_v26 = vadd.f32 %v307_v25, %v306_v24 }
  0x32   : > { %v309_v27 = vrot.slane %v308_v26, 1 }
  0x34   : > { %v310_v28 = vadd.f32 %v309_v27, %v308_v26 }
  0x36   : > { %v311_v29 = vmul.f32 0.0625, %v310_v28 }
  0x38   : > { %v312_v31 = vadd.f32 1e-05, %v311_v29 }
  0x3a   : > { %587 = vrsqrt.f32 %v312_v31 }
  0x3b   : > { %589 = vrcp.f32 %v414_v47 }
  0x44   : > { %v588_v36 = vpop.eup %587 }
  0x45   : > { %v315_v37 = vmul.f32 %v588_v36, %v298_v16  ;;  %v316_v38 = vmul.f32 %v588_v36, %v299_v17  ;;  %v314_v39 = vmul.f32 %v588_v36, %v312_v31  ;;  %v590_v48 = vpop.eup %589 }
  0x46   : > { %v422_v52 = vrot.slane %v590_v48, %v320_v33 }
  0x47   : > { %v323_v41 = vmul.f32 %v321_v35, %v315_v37  ;;  %v324_v42 = vmul.f32 %v321_v35, %v316_v38 }
  0x49   : > { %v331_v43 = vadd.f32 %v540_v40, %v323_v41  ;;  %v332_v44 = vadd.f32 %v540_v40, %v324_v42 }
  0x4b   : > { %v556_v45 = vpack.c.bf16 %v332_v44, %v331_v43 }
  0x4d   : > { %557 = vmatpush3.bf16.msra.mxu0 %v556_v45 }
  0x50   : > { %553 = vmatmul.mubr.msk.f32.vlgmr.msra.gmra.mrb[0].mxu0 %vm340_vm2, %v333_v46 }
  0x88   : > { %v338_v49 = vpop.permute.xlu0 %337 }
 0x123   : > { %v410_v50 = vpop.f32.mrb[0].mxu0 }
 0x124   : > { %v411_v51 = vadd.f32 %v410_v50, %v338_v49  ;;  %v554_v53 = vpop.f32.mrb[1].mxu0 }
 0x126   : > { %v417_v54 = vsub.f32 %v411_v51, %v540_v40 }
 0x128   : > { %v424_v55 = vmul.f32 %v422_v52, %v417_v54 }
 0x12a   : > { %v425_v56 = vmul.f32 %v424_v55, %v314_v39 }
 0x12c   : > { %v426_v57 = vadd.f32 %v425_v56, %v297_v15 }
 0x12e   : > { %427 = vst.msk [vmem:[%s281_s12] sm:$0xff] %vm286_vm1, %v426_v57 }
 0x12f PF: > { %s15_s20 = sadd.s32 1, %s613_s20   ;;  %s709_s18 = smov %s609_s19 }
 0x130   : > { %p12_p5 = scmp.ge.s32.totalorder %s15_s20, 4   ;;  %s710_s19 = smov %s712_s21 }
 0x132   :  { %14 = sbr.rel (!%p12_p5) target bundleno = 2 (0x2), region = 76 }

</bundles_post_ra>
